<compile_context>
chip_gen: v5e
topology: v5e:2x2
jax: 0.10.0
libtpu: 0.0.40
codegen_flags: <defaults>
</compile_context>

<pallas_src>
import math
import jax
import jax.numpy as jnp
from jax.experimental import pallas as pl
from jax.experimental.pallas import tpu as pltpu

# ---------------- config (small, consistent with the module) ----------------
B, N, DIM = 2, 8, 32
BN = B * N
N_HEAD, N_KV_HEAD = 4, 2
HEAD_DIM = DIM // N_HEAD                      # 8
N_REP = N_HEAD // N_KV_HEAD                   # 2
HD = N_HEAD * HEAD_DIM                        # 32
KVD = N_KV_HEAD * HEAD_DIM                    # 16
QKVD = HD + 2 * KVD                           # 64
MULTIPLE_OF = 32
_hidden = int(2 * (4 * DIM) // 3)             # 85
HIDDEN = MULTIPLE_OF * ((_hidden + MULTIPLE_OF - 1) // MULTIPLE_OF)  # 96
HPAD = 128                                    # HIDDEN padded to the 128-lane boundary
EPS = 1e-6
SCALE = 1.0 / math.sqrt(HEAD_DIM)
MXU_DTYPE = jnp.bfloat16                      # operand dtype for the big projection/FFN matmuls


def _rmsnorm(x, w):
    ms = jnp.mean(x * x, axis=-1, keepdims=True)
    return x * jax.lax.rsqrt(ms + EPS) * w


def transformer_block_kernel(x_ref, cs_ref, wqkv2_ref, wo_ref, w13_ref, w2_ref, norms_ref,
                             out_ref):
    x = x_ref[...]                                   # (N, DIM) f32, one sequence
    anw = norms_ref[0:1, :]                          # attention_norm weight
    fnw = norms_ref[1:2, :]                          # ffn_norm weight

    # --- attention branch ---
    h = _rmsnorm(x, anw)                             # f32 elementwise
    hb = h.astype(MXU_DTYPE)
    # fused Q|K|V projection and its RoPE-rotated twin (rotation folded into the weight in
    # the wrapper); both matmuls issue back-to-back off the same activations.
    qkv = jnp.dot(hb, wqkv2_ref[:, :QKVD], preferred_element_type=jnp.float32)    # (N, QKVD)
    qkvr = jnp.dot(hb, wqkv2_ref[:, QKVD:], preferred_element_type=jnp.float32)   # (N, QKVD)
    # RoPE: cos lanes are 1 and sin lanes are 0 on the V columns, so V passes through.
    qkv = qkv * cs_ref[:, :QKVD] + qkvr * cs_ref[:, QKVD:]

    # per-head activation lane slices (QKVD = 64 lanes, i.e. half a vreg; audited as cheap)
    q = qkv[:, :HD]
    k = qkv[:, HD:HD + KVD]
    v = qkv[:, HD + KVD:]

    # per-sequence causal mask built in-kernel (start_pos = 0)
    ri = jax.lax.broadcasted_iota(jnp.int32, (N, N), 0)
    ci = jax.lax.broadcasted_iota(jnp.int32, (N, N), 1)
    mask = jnp.where(ri >= ci, 0.0, -1e9)

    # Issue all head-score matmuls first (back-to-back MXU pushes), then softmax + PV + wo.
    scores = []
    for hh in range(N_HEAD):
        kvh = hh // N_REP                            # GQA: query head -> kv head
        qh = q[:, hh * HEAD_DIM:(hh + 1) * HEAD_DIM]
        kh = k[:, kvh * HEAD_DIM:(kvh + 1) * HEAD_DIM]
        s = jax.lax.dot_general(qh, kh, (((1,), (1,)), ((), ())),
                                preferred_element_type=jnp.float32) + mask
        scores.append(s)

    # Accumulate the attention output in registers through per-head ROW slices of wo
    # (weight-side head split): no VMEM scratch, no masked partial stores, no read-back.
    attn = jnp.zeros((N, DIM), jnp.float32)
    for hh in range(N_HEAD):
        kvh = hh // N_REP
        vh = v[:, kvh * HEAD_DIM:(kvh + 1) * HEAD_DIM]
        s = scores[hh]
        s = s - jnp.max(s, axis=-1, keepdims=True)
        e = jnp.exp(s)
        p = e * pl.reciprocal(jnp.sum(e, axis=-1, keepdims=True), approx=True)
        oh = jnp.dot(p, vh, preferred_element_type=jnp.float32)          # (N, HEAD_DIM)
        attn = attn + jnp.dot(oh, wo_ref[hh * HEAD_DIM:(hh + 1) * HEAD_DIM, :],
                              preferred_element_type=jnp.float32)

    h1 = x + attn

    # --- feed-forward branch (SwiGLU), w1|w3 fused, HIDDEN padded to 128 lanes ---
    g = _rmsnorm(h1, fnw)                            # f32 elementwise
    gb = g.astype(MXU_DTYPE)
    ac = jnp.dot(gb, w13_ref[...], preferred_element_type=jnp.float32)   # (N, 2*HPAD)
    a = ac[:, :HPAD]                                 # split lands exactly on the 128-lane tile
    c = ac[:, HPAD:]
    ffb = (a * jax.nn.sigmoid(a) * c).astype(MXU_DTYPE)
    ff = jnp.dot(ffb, w2_ref[...], preferred_element_type=jnp.float32)   # (N, DIM)

    out_ref[...] = h1 + ff


def prepare_params(cos, sin, wq_t, wk_t, wv_t, wo_t, w1_t, w2_t, w3_t, anw, fnw):
    """Weight fusion / padding / RoPE-table prep.  Pure layer-prep: run ONCE per layer
    (hoisted out of the per-forward path) and reuse the returned tuple for every call."""
    # fused QKV weight, score scale folded into the Q columns (RoPE is linear -> commutes)
    wqkv = jnp.concatenate([wq_t * SCALE, wk_t, wv_t], axis=1)           # (DIM, QKVD)

    # pair-rotation matrix per head: (x @ R)[2i] = -x[2i+1], (x @ R)[2i+1] = x[2i]
    R = jnp.zeros((HEAD_DIM, HEAD_DIM), jnp.float32)
    idx = jnp.arange(0, HEAD_DIM, 2)
    R = R.at[idx + 1, idx].set(-1.0).at[idx, idx + 1].set(1.0)
    rot = jax.scipy.linalg.block_diag(
        jnp.kron(jnp.eye(N_HEAD + N_KV_HEAD, dtype=jnp.float32), R),     # q + k lanes
        jnp.eye(KVD, dtype=jnp.float32),                                 # v lanes (identity)
    )                                                                    # (QKVD, QKVD)
    # RoPE rotation folded into the weight: qkv_rot = h @ (wqkv @ rot)
    wqkv2 = jnp.concatenate([wqkv, wqkv @ rot], axis=1).astype(MXU_DTYPE)  # (DIM, 2*QKVD=128)

    # packed cos|sin tables over the QKV lanes (cos=1 / sin=0 on V lanes), one DMA
    cos_full = jnp.repeat(cos, 2, axis=-1)                               # (N, HEAD_DIM)
    sin_full = jnp.repeat(sin, 2, axis=-1)
    cos_q = jnp.concatenate([jnp.tile(cos_full, (1, N_HEAD)),
                             jnp.tile(cos_full, (1, N_KV_HEAD)),
                             jnp.ones((N, KVD), jnp.float32)], axis=1)   # (N, QKVD)
    sin_q = jnp.concatenate([jnp.tile(sin_full, (1, N_HEAD)),
                             jnp.tile(sin_full, (1, N_KV_HEAD)),
                             jnp.zeros((N, KVD), jnp.float32)], axis=1)  # (N, QKVD)
    cs = jnp.concatenate([cos_q, sin_q], axis=1)                         # (N, 128) f32

    # fused + lane-padded FFN weights (padded lanes: silu(0)*0 = 0, zero w2 rows -> exact)
    w1_p = jnp.zeros((DIM, HPAD), jnp.float32).at[:, :HIDDEN].set(w1_t)
    w3_p = jnp.zeros((DIM, HPAD), jnp.float32).at[:, :HIDDEN].set(w3_t)
    w13 = jnp.concatenate([w1_p, w3_p], axis=1).astype(MXU_DTYPE)        # (DIM, 2*HPAD)
    w2_p = jnp.zeros((HPAD, DIM), jnp.float32).at[:HIDDEN, :].set(w2_t).astype(MXU_DTYPE)

    norms = jnp.concatenate([anw, fnw], axis=0)                          # (2, DIM) f32
    return cs, wqkv2, wo_t, w13, w2_p, norms


def transformer_block(x, params):
    """x: (B, N, DIM); params: output of prepare_params()."""
    cs, wqkv2, wo, w13, w2_p, norms = params
    x2d = x.reshape(BN, DIM)

    out2d = pl.pallas_call(
        transformer_block_kernel,
        out_shape=jax.ShapeDtypeStruct((BN, DIM), jnp.float32),
        grid=(B,),
        in_specs=[
            pl.BlockSpec((N, DIM), lambda b: (b, 0)),          # x: one sequence per program
            pl.BlockSpec((N, 2 * QKVD), lambda b: (0, 0)),     # packed cos|sin
            pl.BlockSpec((DIM, 2 * QKVD), lambda b: (0, 0)),   # packed wqkv | wqkv@rot
            pl.BlockSpec((HD, DIM), lambda b: (0, 0)),         # wo (f32)
            pl.BlockSpec((DIM, 2 * HPAD), lambda b: (0, 0)),   # packed w1 | w3 (padded)
            pl.BlockSpec((HPAD, DIM), lambda b: (0, 0)),       # w2 (padded)
            pl.BlockSpec((2, DIM), lambda b: (0, 0)),          # packed attn_norm | ffn_norm
        ],
        out_specs=pl.BlockSpec((N, DIM), lambda b: (b, 0)),
        compiler_params=pltpu.CompilerParams(dimension_semantics=("parallel",)),
    )(x2d, cs, wqkv2, wo, w13, w2_p, norms)

    return out2d.reshape(B, N, DIM)


# ---------------- pure-JAX reference (mirrors the PyTorch forward) ----------------
def ref_forward(x, cos, sin, mask, wq_t, wk_t, wv_t, wo_t, w1_t, w2_t, w3_t, anw, fnw):
    def rms(t, w):
        return t * jax.lax.rsqrt(jnp.mean(t * t, -1, keepdims=True) + EPS) * w

    def rope(t, nh):                               # t: (B, N, nh, HEAD_DIM)
        t2 = t.reshape(B, N, nh, HEAD_DIM // 2, 2)
        x0, x1 = t2[..., 0], t2[..., 1]
        c = cos[None, :, None, :]
        s = sin[None, :, None, :]
        o0 = x0 * c - x1 * s
        o1 = x0 * s + x1 * c
        return jnp.stack([o0, o1], axis=-1).reshape(B, N, nh, HEAD_DIM)

    h = rms(x, anw[0])
    q = (h @ wq_t).reshape(B, N, N_HEAD, HEAD_DIM)
    k = (h @ wk_t).reshape(B, N, N_KV_HEAD, HEAD_DIM)
    v = (h @ wv_t).reshape(B, N, N_KV_HEAD, HEAD_DIM)
    q = rope(q, N_HEAD)
    k = rope(k, N_KV_HEAD)
    k = jnp.repeat(k, N_REP, axis=2)               # repeat_kv
    v = jnp.repeat(v, N_REP, axis=2)
    q, k, v = (t.transpose(0, 2, 1, 3) for t in (q, k, v))   # (B, H, N, D)
    scores = (q @ k.transpose(0, 1, 3, 2)) * SCALE + mask[None, None]
    p = jax.nn.softmax(scores, axis=-1)
    o = (p @ v).transpose(0, 2, 1, 3).reshape(B, N, HD)
    h1 = x + o @ wo_t
    g = rms(h1, fnw[0])
    a = g @ w1_t
    ff = (a * jax.nn.sigmoid(a) * (g @ w3_t)) @ w2_t
    return h1 + ff


if __name__ == "__main__":
    key = jax.random.PRNGKey(0)
    ks = jax.random.split(key, 10)

    x = jax.random.normal(ks[0], (B, N, DIM), jnp.float32)

    init = lambda k, shape: (0.02 * jax.random.normal(k, shape, jnp.float32))
    # Linear weights stored as (in, out) == torch_weight.T
    wq_t = init(ks[1], (DIM, HD))
    wk_t = init(ks[2], (DIM, KVD))
    wv_t = init(ks[3], (DIM, KVD))
    wo_t = init(ks[4], (HD, DIM))
    w1_t = init(ks[5], (DIM, HIDDEN))
    w2_t = init(ks[6], (HIDDEN, DIM))
    w3_t = init(ks[7], (DIM, HIDDEN))
    anw = jnp.ones((1, DIM), jnp.float32)          # RMSNorm weights init to ones
    fnw = jnp.ones((1, DIM), jnp.float32)

    # RoPE tables (freqs_cis equivalent): cos/sin of shape (N, HEAD_DIM//2)
    inv_freq = 1.0 / (10000.0 ** (jnp.arange(0, HEAD_DIM, 2, dtype=jnp.float32) / HEAD_DIM))
    theta = jnp.arange(N, dtype=jnp.float32)[:, None] * inv_freq[None, :]
    cos, sin = jnp.cos(theta), jnp.sin(theta)

    # layer prep: done ONCE, reused across forwards
    params = prepare_params(cos, sin, wq_t, wk_t, wv_t, wo_t, w1_t, w2_t, w3_t, anw, fnw)
    params = jax.block_until_ready(params)

    out = transformer_block(x, params)
    out = jax.block_until_ready(out)

    # per-batch causal mask for the reference (start_pos = 0)
    mask = jnp.where(jnp.tril(jnp.ones((N, N), bool)), 0.0, -1e9).astype(jnp.float32)
    ref = ref_forward(x, cos, sin, mask, wq_t, wk_t, wv_t, wo_t, w1_t, w2_t, w3_t, anw, fnw)

    assert out.shape == (B, N, DIM)
    # tolerance 2e-3 to accommodate bf16 MXU operands + the approx EUP reciprocal in softmax
    assert jnp.allclose(out, ref, rtol=2e-3, atol=2e-3), float(jnp.max(jnp.abs(out - ref)))
    print("KERNEL_OK")
</pallas_src>

<mosaic_0001>
module attributes {stable_mosaic.version = 11 : i64} {
  func.func @transformer_block_kernel(%arg0: i32, %arg1: memref<8x32xf32, #tpu.memory_space<vmem>>, %arg2: memref<8x128xf32, #tpu.memory_space<vmem>>, %arg3: memref<32x128xbf16, #tpu.memory_space<vmem>>, %arg4: memref<32x32xf32, #tpu.memory_space<vmem>>, %arg5: memref<32x256xbf16, #tpu.memory_space<vmem>>, %arg6: memref<128x32xbf16, #tpu.memory_space<vmem>>, %arg7: memref<2x32xf32, #tpu.memory_space<vmem>>, %arg8: memref<8x32xf32, #tpu.memory_space<vmem>>) attributes {dimension_semantics = [#tpu.dimension_semantics<parallel>], iteration_bounds = array<i64: 2>, scalar_prefetch = 0 : i64, scratch_operands = 0 : i64, tpu.core_type = #tpu.core_type<tc>, window_params = [{transform_indices = @transform_0, window_bounds = array<i64: 8, 32>}, {pipeline_mode = #tpu.pipeline_mode<synchronous>, transform_indices = @transform_1, window_bounds = array<i64: 8, 128>}, {pipeline_mode = #tpu.pipeline_mode<synchronous>, transform_indices = @transform_2, window_bounds = array<i64: 32, 128>}, {pipeline_mode = #tpu.pipeline_mode<synchronous>, transform_indices = @transform_3, window_bounds = array<i64: 32, 32>}, {pipeline_mode = #tpu.pipeline_mode<synchronous>, transform_indices = @transform_4, window_bounds = array<i64: 32, 256>}, {pipeline_mode = #tpu.pipeline_mode<synchronous>, transform_indices = @transform_5, window_bounds = array<i64: 128, 32>}, {pipeline_mode = #tpu.pipeline_mode<synchronous>, transform_indices = @transform_6, window_bounds = array<i64: 2, 32>}, {transform_indices = @transform_7, window_bounds = array<i64: 8, 32>}]} {
    %c0 = arith.constant 0 : index
    %c0_0 = arith.constant 0 : index
    %0 = vector.load %arg1[%c0, %c0_0] : memref<8x32xf32, #tpu.memory_space<vmem>>, vector<8x32xf32>
    %c0_1 = arith.constant 0 : index
    %c0_2 = arith.constant 0 : index
    %1 = vector.load %arg7[%c0_1, %c0_2] : memref<2x32xf32, #tpu.memory_space<vmem>>, vector<1x32xf32>
    %c1 = arith.constant 1 : index
    %c0_3 = arith.constant 0 : index
    %2 = vector.load %arg7[%c1, %c0_3] : memref<2x32xf32, #tpu.memory_space<vmem>>, vector<1x32xf32>
    %3 = arith.mulf %0, %0 : vector<8x32xf32>
    %cst = arith.constant dense<0.000000e+00> : vector<8xf32>
    %4 = vector.multi_reduction <add>, %3, %cst [1] : vector<8x32xf32> to vector<8xf32>
    %5 = vector.shape_cast %4 : vector<8xf32> to vector<8x1xf32>
    %cst_4 = arith.constant 3.200000e+01 : f32
    %6 = vector.broadcast %cst_4 : f32 to vector<8x1xf32>
    %7 = arith.divf %5, %6 : vector<8x1xf32>
    %cst_5 = arith.constant 9.99999997E-7 : f32
    %8 = vector.broadcast %cst_5 : f32 to vector<8x1xf32>
    %9 = arith.addf %7, %8 : vector<8x1xf32>
    %10 = math.rsqrt %9 : vector<8x1xf32>
    %11 = vector.broadcast %10 : vector<8x1xf32> to vector<8x32xf32>
    %12 = arith.mulf %0, %11 : vector<8x32xf32>
    %13 = vector.broadcast %1 : vector<1x32xf32> to vector<8x32xf32>
    %14 = arith.mulf %12, %13 : vector<8x32xf32>
    %15 = arith.truncf %14 : vector<8x32xf32> to vector<8x32xbf16>
    %c0_6 = arith.constant 0 : index
    %c0_7 = arith.constant 0 : index
    %16 = vector.load %arg3[%c0_6, %c0_7] : memref<32x128xbf16, #tpu.memory_space<vmem>>, vector<32x64xbf16>
    %cst_8 = arith.constant dense<0.000000e+00> : vector<8x64xf32>
    %17 = tpu.matmul %15, %16, %cst_8 {dimension_numbers = #tpu.dot_dimension_numbers<[1], [0], [0], [1], [0, 0, 1, 1], [], []>} : vector<8x32xbf16>, vector<32x64xbf16>, vector<8x64xf32> -> vector<8x64xf32>
    %c0_9 = arith.constant 0 : index
    %c64 = arith.constant 64 : index
    %18 = vector.load %arg3[%c0_9, %c64] : memref<32x128xbf16, #tpu.memory_space<vmem>>, vector<32x64xbf16>
    %cst_10 = arith.constant dense<0.000000e+00> : vector<8x64xf32>
    %19 = tpu.matmul %15, %18, %cst_10 {dimension_numbers = #tpu.dot_dimension_numbers<[1], [0], [0], [1], [0, 0, 1, 1], [], []>} : vector<8x32xbf16>, vector<32x64xbf16>, vector<8x64xf32> -> vector<8x64xf32>
    %c0_11 = arith.constant 0 : index
    %c0_12 = arith.constant 0 : index
    %20 = vector.load %arg2[%c0_11, %c0_12] : memref<8x128xf32, #tpu.memory_space<vmem>>, vector<8x64xf32>
    %21 = arith.mulf %17, %20 : vector<8x64xf32>
    %c0_13 = arith.constant 0 : index
    %c64_14 = arith.constant 64 : index
    %22 = vector.load %arg2[%c0_13, %c64_14] : memref<8x128xf32, #tpu.memory_space<vmem>>, vector<8x64xf32>
    %23 = arith.mulf %19, %22 : vector<8x64xf32>
    %24 = arith.addf %21, %23 : vector<8x64xf32>
    %25 = vector.extract_strided_slice %24 {offsets = [0, 0], sizes = [8, 32], strides = [1, 1]} : vector<8x64xf32> to vector<8x32xf32>
    %26 = vector.extract_strided_slice %24 {offsets = [0, 32], sizes = [8, 16], strides = [1, 1]} : vector<8x64xf32> to vector<8x16xf32>
    %27 = vector.extract_strided_slice %24 {offsets = [0, 48], sizes = [8, 16], strides = [1, 1]} : vector<8x64xf32> to vector<8x16xf32>
    %28 = tpu.iota {dimensions = array<i32: 0>} : vector<8x8xi32>
    %29 = tpu.iota {dimensions = array<i32: 1>} : vector<8x8xi32>
    %30 = arith.cmpi sge, %28, %29 : vector<8x8xi32>
    %cst_15 = arith.constant 0.000000e+00 : f32
    %cst_16 = arith.constant -1.000000e+09 : f32
    %31 = vector.broadcast %cst_15 : f32 to vector<8x8xf32>
    %32 = vector.broadcast %cst_16 : f32 to vector<8x8xf32>
    %33 = arith.select %30, %31, %32 : vector<8x8xi1>, vector<8x8xf32>
    %34 = vector.extract_strided_slice %25 {offsets = [0, 0], sizes = [8, 8], strides = [1, 1]} : vector<8x32xf32> to vector<8x8xf32>
    %35 = vector.extract_strided_slice %26 {offsets = [0, 0], sizes = [8, 8], strides = [1, 1]} : vector<8x16xf32> to vector<8x8xf32>
    %cst_17 = arith.constant dense<0.000000e+00> : vector<8x8xf32>
    %36 = tpu.matmul %34, %35, %cst_17 {dimension_numbers = #tpu.dot_dimension_numbers<[1], [1], [0], [0], [0, 0, 1, 0], [], []>} : vector<8x8xf32>, vector<8x8xf32>, vector<8x8xf32> -> vector<8x8xf32>
    %37 = arith.addf %36, %33 : vector<8x8xf32>
    %38 = vector.extract_strided_slice %25 {offsets = [0, 8], sizes = [8, 8], strides = [1, 1]} : vector<8x32xf32> to vector<8x8xf32>
    %39 = vector.extract_strided_slice %26 {offsets = [0, 0], sizes = [8, 8], strides = [1, 1]} : vector<8x16xf32> to vector<8x8xf32>
    %cst_18 = arith.constant dense<0.000000e+00> : vector<8x8xf32>
    %40 = tpu.matmul %38, %39, %cst_18 {dimension_numbers = #tpu.dot_dimension_numbers<[1], [1], [0], [0], [0, 0, 1, 0], [], []>} : vector<8x8xf32>, vector<8x8xf32>, vector<8x8xf32> -> vector<8x8xf32>
    %41 = arith.addf %40, %33 : vector<8x8xf32>
    %42 = vector.extract_strided_slice %25 {offsets = [0, 16], sizes = [8, 8], strides = [1, 1]} : vector<8x32xf32> to vector<8x8xf32>
    %43 = vector.extract_strided_slice %26 {offsets = [0, 8], sizes = [8, 8], strides = [1, 1]} : vector<8x16xf32> to vector<8x8xf32>
    %cst_19 = arith.constant dense<0.000000e+00> : vector<8x8xf32>
    %44 = tpu.matmul %42, %43, %cst_19 {dimension_numbers = #tpu.dot_dimension_numbers<[1], [1], [0], [0], [0, 0, 1, 0], [], []>} : vector<8x8xf32>, vector<8x8xf32>, vector<8x8xf32> -> vector<8x8xf32>
    %45 = arith.addf %44, %33 : vector<8x8xf32>
    %46 = vector.extract_strided_slice %25 {offsets = [0, 24], sizes = [8, 8], strides = [1, 1]} : vector<8x32xf32> to vector<8x8xf32>
    %47 = vector.extract_strided_slice %26 {offsets = [0, 8], sizes = [8, 8], strides = [1, 1]} : vector<8x16xf32> to vector<8x8xf32>
    %cst_20 = arith.constant dense<0.000000e+00> : vector<8x8xf32>
    %48 = tpu.matmul %46, %47, %cst_20 {dimension_numbers = #tpu.dot_dimension_numbers<[1], [1], [0], [0], [0, 0, 1, 0], [], []>} : vector<8x8xf32>, vector<8x8xf32>, vector<8x8xf32> -> vector<8x8xf32>
    %49 = arith.addf %48, %33 : vector<8x8xf32>
    %cst_21 = arith.constant 0.000000e+00 : f32
    %50 = vector.broadcast %cst_21 : f32 to vector<8x32xf32>
    %51 = vector.extract_strided_slice %27 {offsets = [0, 0], sizes = [8, 8], strides = [1, 1]} : vector<8x16xf32> to vector<8x8xf32>
    %cst_22 = arith.constant dense<0xFF800000> : vector<8xf32>
    %52 = vector.multi_reduction <maximumf>, %37, %cst_22 [1] : vector<8x8xf32> to vector<8xf32>
    %53 = vector.shape_cast %52 : vector<8xf32> to vector<8x1xf32>
    %54 = vector.broadcast %53 : vector<8x1xf32> to vector<8x8xf32>
    %55 = arith.subf %37, %54 : vector<8x8xf32>
    %56 = math.exp %55 : vector<8x8xf32>
    %cst_23 = arith.constant dense<0.000000e+00> : vector<8xf32>
    %57 = vector.multi_reduction <add>, %56, %cst_23 [1] : vector<8x8xf32> to vector<8xf32>
    %58 = vector.shape_cast %57 : vector<8xf32> to vector<8x1xf32>
    %59 = tpu.reciprocal %58 {approx = true} : vector<8x1xf32> -> vector<8x1xf32>
    %60 = vector.broadcast %59 : vector<8x1xf32> to vector<8x8xf32>
    %61 = arith.mulf %56, %60 : vector<8x8xf32>
    %cst_24 = arith.constant dense<0.000000e+00> : vector<8x8xf32>
    %62 = tpu.matmul %61, %51, %cst_24 {dimension_numbers = #tpu.dot_dimension_numbers<[1], [0], [0], [1], [0, 0, 1, 1], [], []>} : vector<8x8xf32>, vector<8x8xf32>, vector<8x8xf32> -> vector<8x8xf32>
    %c0_25 = arith.constant 0 : index
    %c0_26 = arith.constant 0 : index
    %63 = vector.load %arg4[%c0_25, %c0_26] : memref<32x32xf32, #tpu.memory_space<vmem>>, vector<8x32xf32>
    %cst_27 = arith.constant dense<0.000000e+00> : vector<8x32xf32>
    %64 = tpu.matmul %62, %63, %cst_27 {dimension_numbers = #tpu.dot_dimension_numbers<[1], [0], [0], [1], [0, 0, 1, 1], [], []>} : vector<8x8xf32>, vector<8x32xf32>, vector<8x32xf32> -> vector<8x32xf32>
    %65 = arith.addf %50, %64 : vector<8x32xf32>
    %66 = vector.extract_strided_slice %27 {offsets = [0, 0], sizes = [8, 8], strides = [1, 1]} : vector<8x16xf32> to vector<8x8xf32>
    %cst_28 = arith.constant dense<0xFF800000> : vector<8xf32>
    %67 = vector.multi_reduction <maximumf>, %41, %cst_28 [1] : vector<8x8xf32> to vector<8xf32>
    %68 = vector.shape_cast %67 : vector<8xf32> to vector<8x1xf32>
    %69 = vector.broadcast %68 : vector<8x1xf32> to vector<8x8xf32>
    %70 = arith.subf %41, %69 : vector<8x8xf32>
    %71 = math.exp %70 : vector<8x8xf32>
    %cst_29 = arith.constant dense<0.000000e+00> : vector<8xf32>
    %72 = vector.multi_reduction <add>, %71, %cst_29 [1] : vector<8x8xf32> to vector<8xf32>
    %73 = vector.shape_cast %72 : vector<8xf32> to vector<8x1xf32>
    %74 = tpu.reciprocal %73 {approx = true} : vector<8x1xf32> -> vector<8x1xf32>
    %75 = vector.broadcast %74 : vector<8x1xf32> to vector<8x8xf32>
    %76 = arith.mulf %71, %75 : vector<8x8xf32>
    %cst_30 = arith.constant dense<0.000000e+00> : vector<8x8xf32>
    %77 = tpu.matmul %76, %66, %cst_30 {dimension_numbers = #tpu.dot_dimension_numbers<[1], [0], [0], [1], [0, 0, 1, 1], [], []>} : vector<8x8xf32>, vector<8x8xf32>, vector<8x8xf32> -> vector<8x8xf32>
    %c8 = arith.constant 8 : index
    %c0_31 = arith.constant 0 : index
    %78 = vector.load %arg4[%c8, %c0_31] : memref<32x32xf32, #tpu.memory_space<vmem>>, vector<8x32xf32>
    %cst_32 = arith.constant dense<0.000000e+00> : vector<8x32xf32>
    %79 = tpu.matmul %77, %78, %cst_32 {dimension_numbers = #tpu.dot_dimension_numbers<[1], [0], [0], [1], [0, 0, 1, 1], [], []>} : vector<8x8xf32>, vector<8x32xf32>, vector<8x32xf32> -> vector<8x32xf32>
    %80 = arith.addf %65, %79 : vector<8x32xf32>
    %81 = vector.extract_strided_slice %27 {offsets = [0, 8], sizes = [8, 8], strides = [1, 1]} : vector<8x16xf32> to vector<8x8xf32>
    %cst_33 = arith.constant dense<0xFF800000> : vector<8xf32>
    %82 = vector.multi_reduction <maximumf>, %45, %cst_33 [1] : vector<8x8xf32> to vector<8xf32>
    %83 = vector.shape_cast %82 : vector<8xf32> to vector<8x1xf32>
    %84 = vector.broadcast %83 : vector<8x1xf32> to vector<8x8xf32>
    %85 = arith.subf %45, %84 : vector<8x8xf32>
    %86 = math.exp %85 : vector<8x8xf32>
    %cst_34 = arith.constant dense<0.000000e+00> : vector<8xf32>
    %87 = vector.multi_reduction <add>, %86, %cst_34 [1] : vector<8x8xf32> to vector<8xf32>
    %88 = vector.shape_cast %87 : vector<8xf32> to vector<8x1xf32>
    %89 = tpu.reciprocal %88 {approx = true} : vector<8x1xf32> -> vector<8x1xf32>
    %90 = vector.broadcast %89 : vector<8x1xf32> to vector<8x8xf32>
    %91 = arith.mulf %86, %90 : vector<8x8xf32>
    %cst_35 = arith.constant dense<0.000000e+00> : vector<8x8xf32>
    %92 = tpu.matmul %91, %81, %cst_35 {dimension_numbers = #tpu.dot_dimension_numbers<[1], [0], [0], [1], [0, 0, 1, 1], [], []>} : vector<8x8xf32>, vector<8x8xf32>, vector<8x8xf32> -> vector<8x8xf32>
    %c16 = arith.constant 16 : index
    %c0_36 = arith.constant 0 : index
    %93 = vector.load %arg4[%c16, %c0_36] : memref<32x32xf32, #tpu.memory_space<vmem>>, vector<8x32xf32>
    %cst_37 = arith.constant dense<0.000000e+00> : vector<8x32xf32>
    %94 = tpu.matmul %92, %93, %cst_37 {dimension_numbers = #tpu.dot_dimension_numbers<[1], [0], [0], [1], [0, 0, 1, 1], [], []>} : vector<8x8xf32>, vector<8x32xf32>, vector<8x32xf32> -> vector<8x32xf32>
    %95 = arith.addf %80, %94 : vector<8x32xf32>
    %96 = vector.extract_strided_slice %27 {offsets = [0, 8], sizes = [8, 8], strides = [1, 1]} : vector<8x16xf32> to vector<8x8xf32>
    %cst_38 = arith.constant dense<0xFF800000> : vector<8xf32>
    %97 = vector.multi_reduction <maximumf>, %49, %cst_38 [1] : vector<8x8xf32> to vector<8xf32>
    %98 = vector.shape_cast %97 : vector<8xf32> to vector<8x1xf32>
    %99 = vector.broadcast %98 : vector<8x1xf32> to vector<8x8xf32>
    %100 = arith.subf %49, %99 : vector<8x8xf32>
    %101 = math.exp %100 : vector<8x8xf32>
    %cst_39 = arith.constant dense<0.000000e+00> : vector<8xf32>
    %102 = vector.multi_reduction <add>, %101, %cst_39 [1] : vector<8x8xf32> to vector<8xf32>
    %103 = vector.shape_cast %102 : vector<8xf32> to vector<8x1xf32>
    %104 = tpu.reciprocal %103 {approx = true} : vector<8x1xf32> -> vector<8x1xf32>
    %105 = vector.broadcast %104 : vector<8x1xf32> to vector<8x8xf32>
    %106 = arith.mulf %101, %105 : vector<8x8xf32>
    %cst_40 = arith.constant dense<0.000000e+00> : vector<8x8xf32>
    %107 = tpu.matmul %106, %96, %cst_40 {dimension_numbers = #tpu.dot_dimension_numbers<[1], [0], [0], [1], [0, 0, 1, 1], [], []>} : vector<8x8xf32>, vector<8x8xf32>, vector<8x8xf32> -> vector<8x8xf32>
    %c24 = arith.constant 24 : index
    %c0_41 = arith.constant 0 : index
    %108 = vector.load %arg4[%c24, %c0_41] : memref<32x32xf32, #tpu.memory_space<vmem>>, vector<8x32xf32>
    %cst_42 = arith.constant dense<0.000000e+00> : vector<8x32xf32>
    %109 = tpu.matmul %107, %108, %cst_42 {dimension_numbers = #tpu.dot_dimension_numbers<[1], [0], [0], [1], [0, 0, 1, 1], [], []>} : vector<8x8xf32>, vector<8x32xf32>, vector<8x32xf32> -> vector<8x32xf32>
    %110 = arith.addf %95, %109 : vector<8x32xf32>
    %111 = arith.addf %0, %110 : vector<8x32xf32>
    %112 = arith.mulf %111, %111 : vector<8x32xf32>
    %cst_43 = arith.constant dense<0.000000e+00> : vector<8xf32>
    %113 = vector.multi_reduction <add>, %112, %cst_43 [1] : vector<8x32xf32> to vector<8xf32>
    %114 = vector.shape_cast %113 : vector<8xf32> to vector<8x1xf32>
    %cst_44 = arith.constant 3.200000e+01 : f32
    %115 = vector.broadcast %cst_44 : f32 to vector<8x1xf32>
    %116 = arith.divf %114, %115 : vector<8x1xf32>
    %cst_45 = arith.constant 9.99999997E-7 : f32
    %117 = vector.broadcast %cst_45 : f32 to vector<8x1xf32>
    %118 = arith.addf %116, %117 : vector<8x1xf32>
    %119 = math.rsqrt %118 : vector<8x1xf32>
    %120 = vector.broadcast %119 : vector<8x1xf32> to vector<8x32xf32>
    %121 = arith.mulf %111, %120 : vector<8x32xf32>
    %122 = vector.broadcast %2 : vector<1x32xf32> to vector<8x32xf32>
    %123 = arith.mulf %121, %122 : vector<8x32xf32>
    %124 = arith.truncf %123 : vector<8x32xf32> to vector<8x32xbf16>
    %c0_46 = arith.constant 0 : index
    %c0_47 = arith.constant 0 : index
    %125 = vector.load %arg5[%c0_46, %c0_47] : memref<32x256xbf16, #tpu.memory_space<vmem>>, vector<32x256xbf16>
    %cst_48 = arith.constant dense<0.000000e+00> : vector<8x256xf32>
    %126 = tpu.matmul %124, %125, %cst_48 {dimension_numbers = #tpu.dot_dimension_numbers<[1], [0], [0], [1], [0, 0, 1, 1], [], []>} : vector<8x32xbf16>, vector<32x256xbf16>, vector<8x256xf32> -> vector<8x256xf32>
    %127 = vector.extract_strided_slice %126 {offsets = [0, 0], sizes = [8, 128], strides = [1, 1]} : vector<8x256xf32> to vector<8x128xf32>
    %128 = vector.extract_strided_slice %126 {offsets = [0, 128], sizes = [8, 128], strides = [1, 1]} : vector<8x256xf32> to vector<8x128xf32>
    %129 = arith.negf %127 : vector<8x128xf32>
    %130 = math.exp %129 : vector<8x128xf32>
    %cst_49 = arith.constant 1.000000e+00 : f32
    %131 = vector.broadcast %cst_49 : f32 to vector<8x128xf32>
    %132 = arith.addf %131, %130 : vector<8x128xf32>
    %133 = arith.divf %131, %132 : vector<8x128xf32>
    %134 = arith.mulf %127, %133 : vector<8x128xf32>
    %135 = arith.mulf %134, %128 : vector<8x128xf32>
    %136 = arith.truncf %135 : vector<8x128xf32> to vector<8x128xbf16>
    %c0_50 = arith.constant 0 : index
    %c0_51 = arith.constant 0 : index
    %137 = vector.load %arg6[%c0_50, %c0_51] : memref<128x32xbf16, #tpu.memory_space<vmem>>, vector<128x32xbf16>
    %cst_52 = arith.constant dense<0.000000e+00> : vector<8x32xf32>
    %138 = tpu.matmul %136, %137, %cst_52 {dimension_numbers = #tpu.dot_dimension_numbers<[1], [0], [0], [1], [0, 0, 1, 1], [], []>} : vector<8x128xbf16>, vector<128x32xbf16>, vector<8x32xf32> -> vector<8x32xf32>
    %139 = arith.addf %111, %138 : vector<8x32xf32>
    %c0_53 = arith.constant 0 : index
    %c0_54 = arith.constant 0 : index
    %140 = vector.load %arg8[%c0_53, %c0_54] : memref<8x32xf32, #tpu.memory_space<vmem>>, vector<8x32xf32>
    tpu.vector_store %arg8[%c0_53, %c0_54], %139 {strides = array<i32>} : memref<8x32xf32, #tpu.memory_space<vmem>>, vector<8x32xf32>,
    return
  }
  func.func @transform_0(%arg0: i32) -> (i32, i32) {
    %c0_i32 = arith.constant 0 : i32
    %c0_i32_0 = arith.constant 0 : i32
    return %arg0, %c0_i32 : i32, i32
  }
  func.func @transform_1(%arg0: i32) -> (i32, i32) {
    %c0_i32 = arith.constant 0 : i32
    %c0_i32_0 = arith.constant 0 : i32
    %c0_i32_1 = arith.constant 0 : i32
    return %c0_i32, %c0_i32_0 : i32, i32
  }
  func.func @transform_2(%arg0: i32) -> (i32, i32) {
    %c0_i32 = arith.constant 0 : i32
    %c0_i32_0 = arith.constant 0 : i32
    %c0_i32_1 = arith.constant 0 : i32
    return %c0_i32, %c0_i32_0 : i32, i32
  }
  func.func @transform_3(%arg0: i32) -> (i32, i32) {
    %c0_i32 = arith.constant 0 : i32
    %c0_i32_0 = arith.constant 0 : i32
    %c0_i32_1 = arith.constant 0 : i32
    return %c0_i32, %c0_i32_0 : i32, i32
  }
  func.func @transform_4(%arg0: i32) -> (i32, i32) {
    %c0_i32 = arith.constant 0 : i32
    %c0_i32_0 = arith.constant 0 : i32
    %c0_i32_1 = arith.constant 0 : i32
    return %c0_i32, %c0_i32_0 : i32, i32
  }
  func.func @transform_5(%arg0: i32) -> (i32, i32) {
    %c0_i32 = arith.constant 0 : i32
    %c0_i32_0 = arith.constant 0 : i32
    %c0_i32_1 = arith.constant 0 : i32
    return %c0_i32, %c0_i32_0 : i32, i32
  }
  func.func @transform_6(%arg0: i32) -> (i32, i32) {
    %c0_i32 = arith.constant 0 : i32
    %c0_i32_0 = arith.constant 0 : i32
    %c0_i32_1 = arith.constant 0 : i32
    return %c0_i32, %c0_i32_0 : i32, i32
  }
  func.func @transform_7(%arg0: i32) -> (i32, i32) {
    %c0_i32 = arith.constant 0 : i32
    %c0_i32_0 = arith.constant 0 : i32
    return %arg0, %c0_i32 : i32, i32
  }
}

</mosaic_0001>

<bundles_post_ra>
// kernel: tpu_custom_call.1
= control target key start
LH: loop header
LB: loop body
LE: loop exit
PB: predicated region body
PF: predicated region fallthrough
CT: control target
= control target key end

     0   :  { %12 = vsyncpa [#allocation3], 0  ;;  %s1643_s0 = inlined_call_operand.vmem [shape: f32[16,32], index: 0, kind: input, shape index: {}]   ;;  %s1644_s1 = inlined_call_operand.hbm [shape: f32[8,128], index: 1, kind: input, shape index: {}]   ;;  %s1645_s2 = inlined_call_operand.hbm [shape: bf16[32,128], index: 2, kind: input, shape index: {}]   ;;  %s1646_s3 = inlined_call_operand.vmem [shape: f32[32,32], index: 3, kind: input, shape index: {}]   ;;  %s1647_s4 = inlined_call_operand.vmem [shape: bf16[32,256], index: 4, kind: input, shape index: {}]   ;;  %s1648_s5 = inlined_call_operand.vmem [shape: bf16[128,32], index: 5, kind: input, shape index: {}]   ;;  %s1649_s6 = inlined_call_operand.vmem [shape: f32[2,32], index: 6, kind: input, shape index: {}]   ;;  %s1650_s7 = inlined_call_operand.hbm [shape: f32[16,32], index: 7, kind: output, shape index: {}]  }
   0x1   :  { %13 = vsyncpa [#allocation6], 0 }
   0x2   :  { %14 = vsyncpa [#allocation4], 0 }
   0x3   :  { %16 = vsyncpa [#allocation4 + $0x1], 0  ;;  %s1410_s24 = smov 0   ;;  %s1412_s25 = smov 0  }
   0x4   :  { %s1414_s26 = smov 0   ;;  %s1416_s27 = smov 0  }
   0x5 LB: > { %s1431_s28 = sadd.s32 4294967295, %s1354_s27   ;;  %s1019_s29 = sadd.s32 4294967294, %s1354_s27   ;;  %s1354_s27 = sphi %s1416_s27, %s1657_s27   ;;  %s1350_s26 = sphi %s1414_s26, %s1656_s26   ;;  %s1346_s25 = sphi %s1412_s25, %s1655_s25   ;;  %s1342_s24 = sphi %s1410_s24, %s1654_s24  }
   0x6   : > { %s1435_s30 = sadd.s32 1, %s1354_s27   ;;  %s181_s8 = sadd.s32 1, %s1350_s26 }
   0x7   : > { %s178_s9 = ssub.s32 %s1354_s27, %s1435_s30  ;;  %p191_p0 = scmp.ne.s32.totalorder %s1350_s26, %s1346_s25 }
   0x8   : > { %p179_p1 = scmp.eq.s32.totalorder %s178_s9, 0  ;;  %p192_p2 = scmp.eq.s32.totalorder %s1431_s28, 1 }
   0x9   : > { %p197_p3 = scmp.ne.s32.totalorder %s1346_s25, %s1342_s24  ;;  %p198_p4 = scmp.eq.s32.totalorder %s1019_s29, 1 }
   0xa   : > { %s1446_s10 = scalar_select %p179_p1, %s1350_s26, %s181_s8  }
   0xb   : > { %p1448_p5 = por %p192_p2, %p191_p0  ;;  %p1452_p6 = por %p198_p4, %p197_p3 }
   0xc   : > { %p1020_p7 = scmp.ge.s32.totalorder %s1354_s27, 1  ;;  %p205_p8 = scmp.lt.s32.totalorder %s1354_s27, 3 }
   0xd   : > { %p1145_p9 = scmp.eq.s32.totalorder %s1431_s28, 0  ;;  %s217_s16 = sshll.u32 %s1644_s1, 4  ;;  %s218_s16 = int_to_ptr.hbm [resolvable:$true] %s217_s16 }
   0xe   : > { %p1459_p10 = pnand %p1020_p7, %p205_p8  ;;  %s1356_s17 = smov [#allocation2]  }
   0xf   : > { %s219_s18 = sshll.u32 %s1356_s17, 4  ;;  %s228_s21 = sshll.u32 %s1645_s2, 4  ;;  %s220_s18 = int_to_ptr.vmem [resolvable:$true] %s219_s18  ;;  %s229_s21 = int_to_ptr.hbm [resolvable:$true] %s228_s21 }
  0x10   : > { %p1134_p11 = pneg %p1459_p10  ;;  %s1357_s22 = smov [#allocation5]  }
  0x11   : > { %s230_s23 = sshll.u32 %s1357_s22, 4  ;;  %s1358_s29 = smov 64   ;;  %s231_s23 = int_to_ptr.vmem [resolvable:$true] %s230_s23 }
  0x12   : > { %p1135_p12 = pnand %p1145_p9, %p1134_p11  ;;  %s1359_s8 = smov 4  }
  0x13   : > { %265 = sbr.rel (%p1459_p10) target bundleno = 1657 (0x679), region = 48 }
  0x14   : > { %1137 = dma.hbm_to_vmem [thread:$0]  (!%p1135_p12), %s218_s16, 128, %s220_s18, [#allocation3]  }
  0x15   : > { %1140 = dma.hbm_to_vmem [thread:$0]  (!%p1135_p12), %s229_s21, 256, %s231_s23, [#allocation6], %s1358_s29, %s1358_s29, %s1359_s8  }
  0x18   : > { %1329 = dma.done.wait (%p1145_p9), [#allocation3], 128  }
  0x19   : > { %1331 = vsyncadd (%p1145_p9), [#allocation3], 4294967168 }
  0x1a   : > { %1333 = dma.done.wait (%p1145_p9), [#allocation6], 256  }
  0x1b   : > { %1335 = vsyncadd (%p1145_p9), [#allocation6], 4294967040  ;;  %p302_p13 = scmp.lt.s32.totalorder %s1431_s28, 1  ;;  %vm311_vm0 = vcmask 261120   ;;  %v1111_v1 = vld [vmem:[#allocation5 + $0x8] sm:$0xff]  ;;  %v1110_v2 = vld [vmem:[#allocation5] sm:$0xff]  ;;  %v397_v43 = vlaneseq }
  0x1c   : > { %s1360_s17 = smov 64   ;;  %363 = vmatpush.bf16.msra.mxu1 %v1111_v1  ;;  %v1361_v5 = vmov 32.0   ;;  %v389_v17 = vld [vmem:[#allocation2] sm:$0xff]  ;;  %s1362_s20 = smov 88   ;;  %vm406_vm5 = vcmask 64512  }
  0x1d   : > { %s303_s9 = scalar_select %p302_p13, %s1431_s28, 1  ;;  %370 = vrot.lane.b32.xlu1 %v1110_v2, %s1360_s17  ;;  %1198 = vrcp.f32 %v1361_v5  ;;  %v1196_v23 = vld [vmem:[%s1649_s6] ss:$0 sm:$0xff]  ;;  %v398_v44 = vshrl.u32 %v397_v43, 7  ;;  %v400_v45 = vand.u32 127, %v397_v43 }
  0x1e   : > { %s1363_s21 = smov 96   ;;  %s1364_s22 = smov 104   ;;  %v1368_v46 = vmov -1e+09  }
  0x1f   : > { %s1028_s14 = sshll.u32 %s303_s9, 3  ;;  %s1365_s23 = smov 120   ;;  %vm401_vm6 = vcmp.ge.s32.totalorder %v398_v44, %v400_v45 }
  0x20   : > { %s305_s16 = scalar_lea.vmem %s1643_s0, %s1028_s14  ;;  %364 = vmatpush.bf16.msra.mxu1 %v1110_v2  ;;  %s1366_s29 = smov 80   ;;  %v402_v47 = vsel %vm401_vm6, 0.0, %v1368_v46 }
  0x21   : > { %v1488_v0 = vld [vmem:[%s305_s16] sm:$0xff]  ;;  %s1367_s8 = smov 112   ;;  %s1369_s9 = smov 72  }
  0x22   : > { %v310_v3 = vmul.f32 %v1488_v0, %v1488_v0  ;;  %s299_s14 = sand.u32 1, %s1346_s25   ;;  %s1107_s15 = sshll.u32 %s1431_s28, 3 }
  0x23   : > { %v1199_v6 = vpop.eup %1198  ;;  %s1027_s13 = sshll.u32 %s299_s14, 3  ;;  %s933_s18 = scalar_lea.hbm %s1650_s7, %s1107_s15 }
  0x24   : > { %v312_v4 = vsel %vm311_vm0, %v310_v3, 0.0  ;;  %v316_v7 = vmul.f32 32.0, %v1199_v6  ;;  %vm320_vm1 = vweird.f32 %v1199_v6  ;;  %s301_s19 = scalar_lea.vmem [#allocation7], %s1027_s13 }
  0x25   : > { %313 = vadd.xlane.f32.xlu0 %v312_v4  ;;  %392 = vrot.lane.b32.xlu1 %v389_v17, %s1360_s17 }
  0x26   : > { %v317_v8 = vsub.f32 1.0, %v316_v7 }
  0x28   : > { %v318_v9 = vmul.f32 %v1199_v6, %v317_v8 }
  0x2a   : > { %v319_v10 = vadd.f32 %v1199_v6, %v318_v9 }
  0x2c   : > { %v1493_v11 = vsel %vm320_vm1, %v1199_v6, %v319_v10 }
  0x39   : > { %372 = vrot.lane.b32.xlu0 %v1111_v1, %s1360_s17 }
  0x8f   : > { %v371_v24 = vpop.permute.xlu1 %370 }
  0x97   : > { %v393_v31 = vpop.permute.xlu1 %392 }
  0x98   : > { %v314_v12 = vpop.xlane.xlu0 %313 }
  0x99   : > { %v322_v13 = vmul.f32 %v1493_v11, %v314_v12 }
  0x9b   : > { %v323_v14 = vadd.f32 1e-06, %v322_v13  ;;  %v579_v13 = vld [vmem:[%s1646_s3 + $0x8] sm:$0xff] }
  0x9c   : > { %598 = vmatpush.msra.mxu0 %v579_v13  ;;  %v1121_v13 = vld [vmem:[%s1648_s5 + $0x28] sm:$0xff] }
  0x9d   : > { %1200 = vrsqrt.f32 %v323_v14  ;;  %vm330_vm3 = vweird.f32 %v323_v14 }
  0xa3   : > { %v1201_v15 = vpop.eup %1200 }
  0xa4   : > { %v325_v16 = vmul.f32 %v1201_v15, %v323_v14  ;;  %vm331_vm2 = vweird.f32 %v1201_v15 }
  0xa5   : > { %vm332_vm4 = vmor %vm330_vm3, %vm331_vm2 }
  0xa6   : > { %v326_v18 = vmul.f32 %v1201_v15, %v325_v16 }
  0xa8   : > { %v327_v19 = vmul.f32 0.5, %v326_v18 }
  0xaa   : > { %v328_v20 = vsub.f32 1.5, %v327_v19 }
  0xab   : > { %v373_v21 = vpop.permute.xlu0 %372 }
  0xac   : > { %v329_v22 = vmul.f32 %v1201_v15, %v328_v20  ;;  %382 = vmatpush.bf16.msrb.mxu1 %v373_v21 }
  0xae   : > { %v333_v25 = vsel %vm332_vm4, %v1201_v15, %v329_v22  ;;  %v544_v15 = vld [vmem:[%s1646_s3] sm:$0xff] }
  0xaf   : > { %v334_v26 = vmul.f32 %v333_v25, %v1488_v0 }
  0xb0   : > { %383 = vmatpush.bf16.msrb.mxu1 %v371_v24 }
  0xb1   : > { %v336_v27 = vmul.f32 %v1196_v23, %v334_v26 }
  0xb3   : > { %v337_v28 = vpack.c.bf16 %v336_v27, %v336_v27 }
  0xb5   : > { %1037 = vmatmul.msk.bf16.vlgmr.msra.gmra.mxu1 %vm311_vm0, %v337_v28 }
  0xb6   : > { %621 = vmatpush.msra.mxu1 %v544_v15  ;;  %v1119_v15 = vld [vmem:[%s1648_s5 + $0x18] sm:$0xff] }
  0xc5   : > { %1038 = vmatmul.msk.bf16.vlgmr.msrb.gmra.mxu1 %vm311_vm0, %v337_v28 }
 0x132   : > { %v366_v29 = vpop.f32.mrf.mxu1 }
 0x133   : > { %v390_v33 = vmul.f32 %v389_v17, %v366_v29 }
 0x13a   : > { %v368_v30 = vpop.f32.mrf.mxu1 }
 0x13b   : > { %v663_v30 = vld [vmem:[%s1646_s3 + $0x10] sm:$0xff] }
 0x142   : > { %v385_v32 = vpop.f32.mrf.mxu1 }
 0x143   : > { %v395_v34 = vmul.f32 %v393_v31, %v385_v32 }
 0x145   : > { %v1502_v35 = vadd.f32 %v395_v34, %v390_v33 }
 0x147   : > { %457 = vrot.lane.b32.xlu1 %v1502_v35, %s1362_s20  ;;  %404 = vrot.lane.b32.xlu2 %v1502_v35, %s1363_s21  ;;  %s935_s20 = sshll.u32 %s301_s19, 4  ;;  %s937_s21 = sshll.u32 %s933_s18, 4  ;;  %s936_s20 = int_to_ptr.vmem [resolvable:$true] %s935_s20  ;;  %s938_s21 = int_to_ptr.hbm [resolvable:$true] %s937_s21 }
 0x14a   : > { %v387_v36 = vpop.f32.mrf.mxu1 }
 0x14f   : > { %483 = vrot.lane.b32.xlu1 %v1502_v35, %s1364_s22  ;;  %431 = vrot.lane.b32.xlu2 %v1502_v35, %s1365_s23  ;;  %s923_s22 = scalar_lea.sflag [#allocation4], %s299_s14  ;;  %s1298_s23 = sshra.s32 %s938_s21, 4  ;;  %s1299_s23 = int_to_ptr.hbm [resolvable:$true] %s1298_s23 }
 0x150   : > { %s1300_s28 = scalar_lea.hbm %s1299_s23, 8  ;;  %p1305_p3 = scmp.lt.s32.totalorder %s1299_s23, %s1650_s7 }
 0x151   : > { %p1301_p0 = scmp.ne.s32.totalorder %s1299_s23, %s1300_s28 }
 0x153   : > { %p1302_p1 = pnand %p1301_p0, %p1448_p5 }
 0x155   : > { %p1303_p2 = pneg %p1302_p1 }
 0x157   : > { %518 = vrot.lane.b32.xlu1 %v1502_v35, %s1366_s29  ;;  %455 = vrot.lane.b32.xlu2 %v1502_v35, %s1367_s8 }
 0x1a1   : > { %v405_v37 = vpop.permute.xlu2 %404 }
 0x1a2   : > { %1039 = vmatpush.xpose.msk.msra.mxu2 %vm406_vm5, %v405_v37  ;;  %1041 = vmatpush.xpose.msk.msra.mxu3 %vm406_vm5, %v405_v37  ;;  %v722_v37 = vld [vmem:[%s1646_s3 + $0x18] sm:$0xff] }
 0x1a3   : > { %741 = vmatpush.msrb.mxu1 %v722_v37 }
 0x1a5   : > { %1040 = vmatmul.msk.f32.vlgmr.msra.gmra.mxu2 %vm406_vm5, %v1502_v35 }
 0x1a9   : > { %v432_v38 = vpop.permute.xlu2 %431 }
 0x1aa   : > { %1042 = vmatmul.msk.f32.vlgmr.msra.gmra.mxu3 %vm406_vm5, %v432_v38 }
 0x1b1   : > { %v456_v40 = vpop.permute.xlu2 %455 }
 0x1b9   : > { %v458_v39 = vpop.permute.xlu1 %457 }
 0x1ba   : > { %1043 = vmatpush.xpose.msk.msrb.mxu2 %vm406_vm5, %v458_v39  ;;  %1045 = vmatpush.xpose.msk.msrb.mxu3 %vm406_vm5, %v458_v39 }
 0x1bd   : > { %1044 = vmatmul.msk.f32.vlgmr.msrb.gmra.mxu2 %vm406_vm5, %v456_v40 }
 0x1c1   : > { %v484_v41 = vpop.permute.xlu1 %483 }
 0x1c2   : > { %1046 = vmatmul.msk.f32.vlgmr.msrb.gmra.mxu3 %vm406_vm5, %v484_v41 }
 0x1c9   : > { %v519_v42 = vpop.permute.xlu1 %518 }
 0x1ca   : > { %539 = vmatpush.msra.mxu2 %v519_v42  ;;  %574 = vmatpush.msra.mxu3 %v519_v42 }
 0x1cc   : > { %682 = vmatpush.msrb.mxu3 %v663_v30 }
 0x228   : > { %v428_v48 = vpop.f32.mrf.mxu2 }
 0x229   : > { %v429_v49 = vadd.f32 %v428_v48, %v402_v47 }
 0x22b   : > { %v507_v50 = vsel %vm406_vm5, %v429_v49, -inf }
 0x22c   : > { %508 = vmax.xlane.f32.xlu1 %v507_v50  ;;  %v1115_v50 = vld [vmem:[%s1647_s4 + $0x14] sm:$0xf0] }
 0x22d   : > { %v452_v51 = vpop.f32.mrf.mxu3 }
 0x22e   : > { %v453_v52 = vadd.f32 %v452_v51, %v402_v47  ;;  %v1114_v51 = vld [vmem:[%s1647_s4 + $0x14] sm:$0xf] }
 0x230   : > { %v545_v53 = vsel %vm406_vm5, %v453_v52, -inf }
 0x231   : > { %546 = vmax.xlane.f32.xlu2 %v545_v53 }
 0x240   : > { %v480_v54 = vpop.f32.mrf.mxu2 }
 0x241   : > { %v481_v55 = vadd.f32 %v480_v54, %v402_v47  ;;  %v1057_v54 = vld [vmem:[%s1647_s4] sm:$0xf] }
 0x243   : > { %v626_v56 = vsel %vm406_vm5, %v481_v55, -inf }
 0x244   : > { %627 = vmax.xlane.f32.xlu2 %v626_v56  ;;  %v1112_v56 = vld [vmem:[%s1647_s4 + $0x4] sm:$0xf] }
 0x245   : > { %v504_v4 = vpop.f32.mrf.mxu3 }
 0x246   : > { %v505_v5 = vadd.f32 %v504_v4, %v402_v47 }
 0x248   : > { %v688_v8 = vsel %vm406_vm5, %v505_v5, -inf }
 0x29f   : > { %v509_v57 = vpop.xlane.xlu1 %508 }
 0x2a0   : > { %v510_v58 = vsub.f32 %v429_v49, %v509_v57  ;;  %v1065_v49 = vld [vmem:[%s1647_s4 + $0x10] sm:$0xf] }
 0x2a2   : > { %v511_v59 = vmul.f32 1.442695, %v510_v58  ;;  %v1059_v58 = vld [vmem:[%s1647_s4 + $0x8] sm:$0xf0] }
 0x2a4   : > { %1202 = vpow2.f32 %v511_v59  ;;  %v547_v60 = vpop.xlane.xlu2 %546  ;;  %v1062_v59 = vor.u32 %v1112_v56, %v1059_v58 }
 0x2a5   : > { %v548_v61 = vsub.f32 %v453_v52, %v547_v60  ;;  %v1067_v52 = vld [vmem:[%s1647_s4 + $0x18] sm:$0xf0] }
 0x2a6   : > { %v1070_v53 = vor.u32 %v1114_v51, %v1067_v52 }
 0x2a7   : > { %v549_v62 = vmul.f32 1.442695, %v548_v61 }
 0x2a9   : > { %1204 = vpow2.f32 %v549_v62 }
 0x2aa   : > { %v1203_v63 = vpop.eup %1202 }
 0x2ab   : > { %v513_v1 = vsel %vm406_vm5, %v1203_v63, 0.0 }
 0x2ac   : > { %514 = vadd.xlane.f32.xlu2 %v513_v1 }
 0x2af   : > { %v1205_v2 = vpop.eup %1204 }
 0x2b0   : > { %v551_v3 = vsel %vm406_vm5, %v1205_v2, 0.0 }
 0x2b1   : > { %552 = vadd.xlane.f32.xlu0 %v551_v3 }
 0x2b7   : > { %v628_v6 = vpop.xlane.xlu2 %627 }
 0x2b8   : > { %v629_v7 = vsub.f32 %v481_v55, %v628_v6  ;;  %v1113_v55 = vld [vmem:[%s1647_s4 + $0x4] sm:$0xf0]  ;;  %v1197_v6 = vld [vmem:[%s1649_s6 + $0x1] ss:$0 sm:$0xff] }
 0x2b9   : > { %689 = vmax.xlane.f32.xlu0 %v688_v8  ;;  %v1058_v57 = vor.u32 %v1113_v55, %v1057_v54 }
 0x2ba   : > { %v630_v9 = vmul.f32 1.442695, %v629_v7 }
 0x2bc   : > { %1206 = vpow2.f32 %v630_v9 }
 0x2c2   : > { %v1207_v10 = vpop.eup %1206 }
 0x2c3   : > { %v632_v12 = vsel %vm406_vm5, %v1207_v10, 0.0 }
 0x2c4   : > { %637 = vrot.lane.b32.xlu2 %v1502_v35, %s1369_s9  ;;  %633 = vadd.xlane.f32.xlu0 %v632_v12  ;;  %v1122_v12 = vld [vmem:[%s1648_s5 + $0x30] sm:$0xff]  ;;  %s1304_s9 = scalar_lea.hbm %s1650_s7, 16 }
 0x2c5   : > { %p1306_p4 = scmp.lt.s32.totalorder %s1304_s9, %s1300_s28 }
 0x2c7   : > { %p1307_p7 = por %p1306_p4, %p1305_p3 }
 0x2c9   : > { %p1308_p8 = pnand %p1307_p7, %p1303_p2 }
 0x31f   : > { %v515_v14 = vpop.xlane.xlu2 %514 }
 0x320   : > { %1208 = vrcp.f32 %v515_v14  ;;  %v1120_v14 = vld [vmem:[%s1648_s5 + $0x20] sm:$0xff] }
 0x324   : > { %v553_v16 = vpop.xlane.xlu0 %552 }
 0x325   : > { %1210 = vrcp.f32 %v553_v16  ;;  %v1118_v16 = vld [vmem:[%s1648_s5 + $0x10] sm:$0xff] }
 0x326   : > { %v1209_v17 = vpop.eup %1208 }
 0x327   : > { %v517_v18 = vmul.f32 %v1209_v17, %v1203_v63  ;;  %v638_v19 = vpop.permute.xlu2 %637  ;;  %v1117_v17 = vld [vmem:[%s1648_s5 + $0x8] sm:$0xff] }
 0x328   : > { %658 = vmatpush.msrb.mxu2 %v638_v19  ;;  %717 = vmatpush.msrb.mxu0 %v638_v19 }
 0x329   : > { %1047 = vmatmul.msk.f32.vlgmr.msra.gmra.mxu2 %vm406_vm5, %v517_v18  ;;  %v1116_v18 = vld [vmem:[%s1648_s5] sm:$0xff] }
 0x32b   : > { %v1211_v20 = vpop.eup %1210 }
 0x32c   : > { %v555_v21 = vmul.f32 %v1211_v20, %v1205_v2  ;;  %v690_v22 = vpop.xlane.xlu0 %689 }
 0x32d   : > { %v691_v23 = vsub.f32 %v505_v5, %v690_v22 }
 0x32e   : > { %1048 = vmatmul.msk.f32.vlgmr.msra.gmra.mxu3 %vm406_vm5, %v555_v21 }
 0x32f   : > { %v692_v24 = vmul.f32 1.442695, %v691_v23  ;;  %814 = vmatpush.bf16.msra.mxu3 %v1070_v53 }
 0x331   : > { %1212 = vpow2.f32 %v692_v24 }
 0x333   : > { %815 = vmatpush.bf16.msra.mxu3 %v1062_v59 }
 0x337   : > { %v1213_v25 = vpop.eup %1212  ;;  %v634_v26 = vpop.xlane.xlu0 %633 }
 0x338   : > { %1214 = vrcp.f32 %v634_v26  ;;  %v694_v27 = vsel %vm406_vm5, %v1213_v25, 0.0 }
 0x339   : > { %695 = vadd.xlane.f32.xlu1 %v694_v27 }
 0x33e   : > { %v1215_v28 = vpop.eup %1214 }
 0x33f   : > { %v636_v29 = vmul.f32 %v1215_v28, %v1207_v10  ;;  %v1123_v10 = vld [vmem:[%s1648_s5 + $0x38] sm:$0xff] }
 0x341   : > { %1051 = vmatmul.msk.f32.vlgmr.msrb.gmra.mxu2 %vm406_vm5, %v636_v29 }
 0x3ac   : > { %v696_v31 = vpop.xlane.xlu1 %695  ;;  %v541_v32 = vpop.f32.mrf.mxu2 }
 0x3ad   : > { %1050 = vmatmul.msk.f32.vlgmr.msra.gmra.mxu1 %vm406_vm5, %v541_v32  ;;  %1216 = vrcp.f32 %v696_v31 }
 0x3b1   : > { %v576_v33 = vpop.f32.mrf.mxu3 }
 0x3b2   : > { %1049 = vmatmul.msk.f32.vlgmr.msra.gmra.mxu0 %vm406_vm5, %v576_v33 }
 0x3b3   : > { %v1217_v34 = vpop.eup %1216  ;;  %907 = vmatpush.bf16.msra.mxu0 %v1123_v10 }
 0x3b4   : > { %v698_v35 = vmul.f32 %v1217_v34, %v1213_v25 }
 0x3b7   : > { %908 = vmatpush.bf16.msra.mxu0 %v1122_v12 }
 0x3ba   : > { %1053 = vmatmul.msk.f32.vlgmr.msrb.gmra.mxu0 %vm406_vm5, %v698_v35 }
 0x3bb   : > { %909 = vmatpush.bf16.msra.mxu0 %v1121_v13 }
 0x3bf   : > { %910 = vmatpush.bf16.msra.mxu0 %v1120_v14 }
 0x3c3   : > { %911 = vmatpush.bf16.msra.mxu0 %v1119_v15 }
 0x3c4   : > { %v660_v36 = vpop.f32.mrf.mxu2 }
 0x3c5   : > { %1052 = vmatmul.msk.f32.vlgmr.msrb.gmra.mxu3 %vm406_vm5, %v660_v36 }
 0x3c7   : > { %912 = vmatpush.bf16.msra.mxu0 %v1118_v16 }
 0x3cb   : > { %913 = vmatpush.bf16.msra.mxu0 %v1117_v17 }
 0x3cf   : > { %914 = vmatpush.bf16.msra.mxu0 %v1116_v18 }
 0x42a   : > { %v623_v40 = vpop.f32.mrf.mxu1 }
 0x42f   : > { %v600_v38 = vpop.f32.mrf.mxu0 }
 0x430   : > { %v624_v42 = vadd.f32 %v623_v40, %v600_v38 }
 0x437   : > { %v719_v39 = vpop.f32.mrf.mxu0 }
 0x438   : > { %1054 = vmatmul.msk.f32.vlgmr.msrb.gmra.mxu1 %vm406_vm5, %v719_v39 }
 0x448   : > { %v684_v41 = vpop.f32.mrf.mxu3 }
 0x449   : > { %v687_v43 = vadd.f32 %v684_v41, %v624_v42 }
 0x4b5   : > { %v743_v44 = vpop.f32.mrf.mxu1 }
 0x4b6   : > { %v746_v45 = vadd.f32 %v743_v44, %v687_v43 }
 0x4b8   : > { %v1549_v46 = vadd.f32 %v746_v45, %v1488_v0  ;;  %v1066_v0 = vor.u32 %v1115_v50, %v1065_v49 }
 0x4ba   : > { %v748_v47 = vmul.f32 %v1549_v46, %v1549_v46  ;;  %801 = vmatpush.bf16.msra.mxu2 %v1066_v0 }
 0x4bc   : > { %v749_v48 = vsel %vm311_vm0, %v748_v47, 0.0 }
 0x4bd   : > { %750 = vadd.xlane.f32.xlu0 %v749_v48 }
 0x4be   : > { %802 = vmatpush.bf16.msra.mxu2 %v1058_v57 }
 0x530   : > { %v751_v60 = vpop.xlane.xlu0 %750 }
 0x531   : > { %v752_v61 = vmul.f32 %v751_v60, %v1493_v11 }
 0x533   : > { %v753_v62 = vadd.f32 1e-06, %v752_v61 }
 0x535   : > { %1218 = vrsqrt.f32 %v753_v62  ;;  %vm760_vm8 = vweird.f32 %v753_v62 }
 0x53b   : > { %v1219_v63 = vpop.eup %1218 }
 0x53c   : > { %v755_v1 = vmul.f32 %v1219_v63, %v753_v62  ;;  %vm761_vm7 = vweird.f32 %v1219_v63 }
 0x53d   : > { %vm762_vm9 = vmor %vm760_vm8, %vm761_vm7 }
 0x53e   : > { %v756_v2 = vmul.f32 %v1219_v63, %v755_v1 }
 0x540   : > { %v757_v3 = vmul.f32 0.5, %v756_v2 }
 0x542   : > { %v758_v4 = vsub.f32 1.5, %v757_v3 }
 0x544   : > { %v759_v5 = vmul.f32 %v1219_v63, %v758_v4 }
 0x546   : > { %v763_v7 = vsel %vm762_vm9, %v1219_v63, %v759_v5 }
 0x547   : > { %v764_v8 = vmul.f32 %v763_v7, %v1549_v46 }
 0x549   : > { %v766_v9 = vmul.f32 %v1197_v6, %v764_v8 }
 0x54b   : > { %v767_v11 = vpack.c.bf16 %v766_v9, %v766_v9 }
 0x54d   : > { %1071 = vmatmul.msk.bf16.vlgmr.msra.gmra.mxu2 %vm311_vm0, %v767_v11  ;;  %1072 = vmatmul.msk.bf16.vlgmr.msra.gmra.mxu3 %vm311_vm0, %v767_v11 }
 0x5d0   : > { %v804_v19 = vpop.f32.mrf.mxu2  ;;  %v817_v20 = vpop.f32.mrf.mxu3 }
 0x5d1   : > { %v1073_v21 = vmul.f32 -1.442695, %v804_v19 }
 0x5d3   : > { %1220 = vpow2.f32 %v1073_v21 }
 0x5d8   : > { %v806_v22 = vpop.f32.mrf.mxu2  ;;  %v819_v23 = vpop.f32.mrf.mxu3 }
 0x5d9   : > { %v1221_v24 = vpop.eup %1220 }
 0x5da   : > { %v824_v25 = vadd.f32 1.0, %v1221_v24 }
 0x5dc   : > { %1222 = vrcp.f32 %v824_v25  ;;  %v836_v29 = vand.u32 2147483648, %v824_v25  ;;  %v834_v31 = vand.u32 2147483647, %v824_v25  ;;  %vm830_vm11 = vweird.f32 %v824_v25 }
 0x5de   : > { %v837_v33 = vor.u32 1.1754944e-38, %v836_v29  ;;  %vm835_vm13 = vcmp.eq.f32.partialorder %v834_v31, 8.507059e+37 }
 0x5e2   : > { %v1223_v26 = vpop.eup %1222 }
 0x5e3   : > { %v826_v27 = vmul.f32 %v1223_v26, %v824_v25  ;;  %vm831_vm10 = vweird.f32 %v1223_v26 }
 0x5e4   : > { %vm832_vm12 = vmor %vm830_vm11, %vm831_vm10 }
 0x5e5   : > { %v827_v28 = vsub.f32 1.0, %v826_v27 }
 0x5e7   : > { %v828_v30 = vmul.f32 %v1223_v26, %v827_v28 }
 0x5e9   : > { %v829_v32 = vadd.f32 %v1223_v26, %v828_v30 }
 0x5eb   : > { %v833_v34 = vsel %vm832_vm12, %v1223_v26, %v829_v32 }
 0x5ec   : > { %v838_v35 = vsel %vm835_vm13, %v837_v33, %v833_v34 }
 0x5ed   : > { %v840_v36 = vmul.f32 %v838_v35, %v804_v19 }
 0x5ef   : > { %v841_v37 = vmul.f32 %v840_v36, %v817_v20 }
 0x5f1   : > { %v842_v38 = vpack.c.bf16 %v841_v37, %v841_v37 }
 0x5f3   : > { %915 = vmatmul.bf16.vlgmr.msra.gmra.mxu0 %v842_v38 }
 0x670   : > { %v916_v39 = vpop.f32.mrf.mxu0 }
 0x671   : > { %v920_v40 = vadd.f32 %v916_v39, %v1549_v46 }
 0x673   : > { %921 = vst.msk [vmem:[%s301_s19] sm:$0xff] %vm311_vm0, %v920_v40 }
 0x674   : > { %1311 = shalt.err (!%p1308_p8)
}
 0x675   : > { %1132 = dma.vmem_to_hbm [thread:$0]  (%p1448_p5), %s936_s20, 128, %s938_s21, %s923_s22  }
 0x678   : > { %v918_v41 = vpop.f32.mrf.mxu0 }
 0x679 PF: > { %p1149_p9 = scmp.ge.s32.totalorder %s1354_s27, 2  ;;  %s949_s14 = sand.u32 1, %s1342_s24  }
 0x67a   : > { %s950_s16 = scalar_lea.sflag [#allocation4], %s949_s14 }
 0x67b   : > { %p1142_p10 = pnand %p1149_p9, %p1452_p6 }
 0x67d   : > { %p1143_p11 = pneg %p1142_p10 }
 0x67f   : > { %1337 = dma.done.wait (%p1143_p11), %s950_s16, 128  }
 0x680   : > { %1339 = vsyncadd (%p1143_p11), %s950_s16, 4294967168  ;;  %p19_p12 = scmp.ge.s32.totalorder %s1435_s30, 4   ;;  %s1654_s24 = smov %s1346_s25 }
 0x681   : > { %s1655_s25 = smov %s1350_s26  ;;  %s1656_s26 = smov %s1446_s10 }
 0x682   : > { %s1657_s27 = smov %s1435_s30  ;;  %21 = sbr.rel (!%p19_p12) target bundleno = 5 (0x5), region = 92 }
 0x687   :  { %956 = vsyncpa [#allocation3], 1 }
 0x688   :  { %958 = vsyncpa [#allocation3 + $0x1], 1 }
 0x689   :  { %959 = vsyncpa [#allocation6], 1 }
 0x68a   :  { %960 = vsyncpa [#allocation4], 1 }
 0x68b   :  { %962 = vsyncpa [#allocation4 + $0x1], 1 }

</bundles_post_ra>
